<compile_context>
chip_gen: v7x
topology: tpu7x:2x2x1
jax: 0.10.0
libtpu: 0.0.40
codegen_flags: <defaults>
</compile_context>

<pallas_src>
import functools

import numpy as np
import jax
import jax.numpy as jnp
from jax.experimental import pallas as pl
from jax.experimental.pallas import tpu as pltpu


def _homm_kernel(xs_row_ref, xt_row_ref, xsT_col_ref, xtT_col_ref, out_ref,
                 *, block_n, block_m):
    """One (row-block i, col-block j) tile of sum_{nm} Gs^3 - 2*Gst^3 + Gt^3."""
    i = pl.program_id(0)   # Gram row block   ("parallel" axis; owns output row i)
    j = pl.program_id(1)   # Gram column block ("arbitrary" accumulation axis)

    @pl.when(j == 0)
    def _init():
        out_ref[...] = jnp.zeros_like(out_ref)

    def accumulate(tile):
        # Fold (block_n, block_m) -> (8, 128) using only vreg adds (reshapes
        # respect (8, 128) boundaries); the single cross-lane/cross-sublane
        # reduce happens once, in the wrapper, not per grid step.
        p = tile.reshape(block_n // 8, 8, block_m).sum(axis=0)      # (8, block_m)
        p = p.reshape(8, block_m // 128, 128).sum(axis=1)           # (8, 128)
        out_ref[...] = out_ref[...] + p.reshape(1, 8, 128)

    xs_r = xs_row_ref[...]      # (block_n, D), compute dtype (bf16 by default)
    xtT_c = xtT_col_ref[...]    # (D, block_m)

    # Cross term Gst is not symmetric -> every (i, j) tile contributes.
    gst = jnp.dot(xs_r, xtT_c, preferred_element_type=jnp.float32)
    accumulate(-2.0 * (gst * gst * gst))

    # Gs / Gt are symmetric: block (i, j) and (j, i) contribute equally, so visit
    # each unordered pair once with weight 2 off-diagonal.  The parity rule picks
    # ~half of the off-diagonal pairs from each ordering, which keeps per-row work
    # balanced (matters for the v7x 2-core split of the row axis).
    same = i == j
    even = ((i + j) % 2) == 0
    do_sym = same | (even & (i < j)) | (jnp.logical_not(even) & (i > j))

    @pl.when(do_sym)
    def _sym():
        w = jnp.where(same, 1.0, 2.0).astype(jnp.float32)
        gs = jnp.dot(xs_r, xsT_col_ref[...], preferred_element_type=jnp.float32)
        gt = jnp.dot(xt_row_ref[...], xtT_c, preferred_element_type=jnp.float32)
        accumulate(w * (gs * gs * gs + gt * gt * gt))


def _pick_block(n, d, itemsize):
    # Largest MXU-friendly block such that the streamed input tiles (4 inputs x 2
    # pipeline buffers) plus the f32 Gram/cube intermediates stay well under the
    # VMEM budget of every generation (including v7x's 64 MiB physical).
    for b in (512, 256, 128):
        tile_bytes = 4 * 2 * b * d * itemsize   # (block, D) / (D, block) tiles
        gram_bytes = 8 * b * b * 4              # gs/gt/gst + cube temporaries (f32)
        if n >= b and tile_bytes + gram_bytes <= 24 * 1024 * 1024:
            return b
    return 128


def _vmem_limit_bytes():
    # Generation-aware scoped-VMEM limit: ~7/8 of physical, capped at 110 MiB.
    # (v5e/v6e: 128 MiB physical -> ~110 MiB; v7x: 64 MiB physical -> 56 MiB.)
    try:
        cap = int(pltpu.get_tpu_info().vmem_capacity_bytes)
    except Exception:
        cap = 64 * 1024 * 1024
    return min((cap * 7) // 8, 110 * 1024 * 1024)


def homm_loss(xs, xt, *, block=None, compute_dtype=jnp.bfloat16):
    """Pallas TPU HoMM loss; forward-equivalent to the PyTorch HoMM_loss module."""
    assert xs.shape == xt.shape and xs.ndim == 2
    N, D = xs.shape

    # Exact f32 centering (O(N*D), trivially cheap next to the O(N^2*D) kernel).
    xs32 = xs.astype(jnp.float32)
    xt32 = xt.astype(jnp.float32)
    xs_c = xs32 - jnp.mean(xs32, axis=0, keepdims=True)
    xt_c = xt32 - jnp.mean(xt32, axis=0, keepdims=True)

    if block is None:
        block = _pick_block(N, D, np.dtype(compute_dtype).itemsize)

    # Pad the batch axis with zero rows (zero centered rows contribute nothing to
    # any Gram entry); the 1/N^2 scale below uses the true N.  Handles ragged N.
    n_pad = -(-N // block) * block
    if n_pad != N:
        xs_c = jnp.pad(xs_c, ((0, n_pad - N), (0, 0)))
        xt_c = jnp.pad(xt_c, ((0, n_pad - N), (0, 0)))

    xs_c = xs_c.astype(compute_dtype)
    xt_c = xt_c.astype(compute_dtype)
    # Pre-transposed column operands: every in-kernel matmul is the canonical
    # (block, D) @ (D, block) MXU form -> no per-step RHS transpose.
    xs_t = xs_c.T
    xt_t = xt_c.T

    nb = n_pad // block
    kernel = functools.partial(_homm_kernel, block_n=block, block_m=block)

    partials = pl.pallas_call(
        kernel,
        out_shape=jax.ShapeDtypeStruct((nb, 8, 128), jnp.float32),
        grid_spec=pltpu.PrefetchScalarGridSpec(
            num_scalar_prefetch=0,
            grid=(nb, nb),
            in_specs=[
                pl.BlockSpec((block, D), lambda i, j: (i, 0)),   # xs row tile
                pl.BlockSpec((block, D), lambda i, j: (i, 0)),   # xt row tile
                pl.BlockSpec((D, block), lambda i, j: (0, j)),   # xs^T col tile
                pl.BlockSpec((D, block), lambda i, j: (0, j)),   # xt^T col tile
            ],
            out_specs=pl.BlockSpec((1, 8, 128), lambda i, j: (i, 0, 0)),
        ),
        compiler_params=pltpu.CompilerParams(
            # Row-block axis: independent per-row output slabs -> megacore split
            # on v7x.  Col-block axis carries the in-row accumulation.
            dimension_semantics=("parallel", "arbitrary"),
            vmem_limit_bytes=_vmem_limit_bytes(),
        ),
    )(xs_c, xt_c, xs_t, xt_t)

    # Single cross-lane/sublane reduce + single fused scale, outside the kernel.
    # NOTE: for very large D the (block, D) tiles could also be K-tiled; not
    # needed at the shapes this loss is used with.
    total = jnp.sum(partials)
    return total / jnp.float32(float(D) ** 3 * float(N) ** 2)


def homm_loss_ref(xs, xt, quantize=None):
    # Pure-JAX reference mirroring the PyTorch forward exactly.  `quantize`
    # optionally rounds the centered operands (to mirror the kernel's bf16
    # MXU-operand precision) while keeping all moment math in f32.
    xs = xs - jnp.mean(xs, axis=0)
    xt = xt - jnp.mean(xt, axis=0)
    if quantize is not None:
        xs = xs.astype(quantize).astype(jnp.float32)
        xt = xt.astype(quantize).astype(jnp.float32)
    hr_s = jnp.mean(jnp.einsum('ni,nj,nk->nijk', xs, xs, xs), axis=0)
    hr_t = jnp.mean(jnp.einsum('ni,nj,nk->nijk', xt, xt, xt), axis=0)
    return jnp.mean((hr_s - hr_t) ** 2)


if __name__ == "__main__":
    key = jax.random.PRNGKey(0)
    k1, k2 = jax.random.split(key)
    N, D = 8, 32  # small synthetic shapes: batch=8, feature dim=32
    xs = jax.random.normal(k1, (N, D), dtype=jnp.float32)
    xt = jax.random.normal(k2, (N, D), dtype=jnp.float32) * 0.9 + 0.1

    ref = jax.block_until_ready(homm_loss_ref(xs, xt))

    # Exact-precision path (f32 MXU operands): must match the reference tightly.
    loss_f32 = jax.block_until_ready(homm_loss(xs, xt, compute_dtype=jnp.float32))
    assert jnp.allclose(loss_f32, ref, rtol=1e-4, atol=1e-6), (loss_f32, ref)

    # Default perf path (bf16 MXU operands): match a bf16-quantized reference
    # tightly (isolates the deliberate operand rounding from any kernel bug) ...
    loss_bf16 = jax.block_until_ready(homm_loss(xs, xt))
    ref_bf16 = jax.block_until_ready(homm_loss_ref(xs, xt, quantize=jnp.bfloat16))
    assert jnp.allclose(loss_bf16, ref_bf16, rtol=1e-3, atol=1e-5), (loss_bf16, ref_bf16)
    # ... and stay within the documented ~1% envelope of the exact f32 loss.
    assert jnp.allclose(loss_bf16, ref, rtol=5e-2, atol=1e-3), (loss_bf16, ref)

    print("KERNEL_OK")
</pallas_src>

<mosaic_0001>
module attributes {stable_mosaic.version = 11 : i64} {
  func.func @_homm_kernel(%arg0: i32, %arg1: i32, %arg2: memref<128x32xf32, #tpu.memory_space<vmem>>, %arg3: memref<128x32xf32, #tpu.memory_space<vmem>>, %arg4: memref<32x128xf32, #tpu.memory_space<vmem>>, %arg5: memref<32x128xf32, #tpu.memory_space<vmem>>, %arg6: memref<1x8x128xf32, #tpu.memory_space<vmem>>) attributes {dimension_semantics = [#tpu.dimension_semantics<parallel>, #tpu.dimension_semantics<arbitrary>], iteration_bounds = array<i64: 1, 1>, scalar_prefetch = 0 : i64, scratch_operands = 0 : i64, tpu.core_type = #tpu.core_type<tc>, window_params = [{transform_indices = @transform_0, window_bounds = array<i64: 128, 32>}, {transform_indices = @transform_1, window_bounds = array<i64: 128, 32>}, {transform_indices = @transform_2, window_bounds = array<i64: 32, 128>}, {transform_indices = @transform_3, window_bounds = array<i64: 32, 128>}, {transform_indices = @transform_4, window_bounds = array<i64: 1, 8, 128>}]} {
    %c0_i32 = arith.constant 0 : i32
    %0 = arith.cmpi eq, %arg1, %c0_i32 : i32
    %1 = arith.extui %0 : i1 to i32
    %c0_i32_0 = arith.constant 0 : i32
    %2 = arith.cmpi ne, %1, %c0_i32_0 : i32
    scf.if %2 {
      %cst_19 = arith.constant 0.000000e+00 : f32
      %40 = vector.broadcast %cst_19 : f32 to vector<1x8x128xf32>
      %c0_20 = arith.constant 0 : index
      %c0_21 = arith.constant 0 : index
      %c0_22 = arith.constant 0 : index
      %41 = vector.load %arg6[%c0_20, %c0_21, %c0_22] : memref<1x8x128xf32, #tpu.memory_space<vmem>>, vector<1x8x128xf32>
      tpu.vector_store %arg6[%c0_20, %c0_21, %c0_22], %40 {strides = array<i32>} : memref<1x8x128xf32, #tpu.memory_space<vmem>>, vector<1x8x128xf32>,
    } else {
    }
    %c0 = arith.constant 0 : index
    %c0_1 = arith.constant 0 : index
    %3 = vector.load %arg2[%c0, %c0_1] : memref<128x32xf32, #tpu.memory_space<vmem>>, vector<128x32xf32>
    %c0_2 = arith.constant 0 : index
    %c0_3 = arith.constant 0 : index
    %4 = vector.load %arg5[%c0_2, %c0_3] : memref<32x128xf32, #tpu.memory_space<vmem>>, vector<32x128xf32>
    %cst = arith.constant dense<0.000000e+00> : vector<128x128xf32>
    %5 = tpu.matmul %3, %4, %cst {dimension_numbers = #tpu.dot_dimension_numbers<[1], [0], [0], [1], [0, 0, 1, 1], [], []>} : vector<128x32xf32>, vector<32x128xf32>, vector<128x128xf32> -> vector<128x128xf32>
    %6 = arith.mulf %5, %5 : vector<128x128xf32>
    %7 = arith.mulf %6, %5 : vector<128x128xf32>
    %cst_4 = arith.constant -2.000000e+00 : f32
    %8 = vector.broadcast %cst_4 : f32 to vector<128x128xf32>
    %9 = arith.mulf %8, %7 : vector<128x128xf32>
    %10 = vector.shape_cast %9 : vector<128x128xf32> to vector<16x8x128xf32>
    %cst_5 = arith.constant dense<0.000000e+00> : vector<8x128xf32>
    %11 = vector.multi_reduction <add>, %10, %cst_5 [0] : vector<16x8x128xf32> to vector<8x128xf32>
    %12 = vector.shape_cast %11 : vector<8x128xf32> to vector<8x1x128xf32>
    %cst_6 = arith.constant dense<0.000000e+00> : vector<8x128xf32>
    %13 = vector.multi_reduction <add>, %12, %cst_6 [1] : vector<8x1x128xf32> to vector<8x128xf32>
    %c0_7 = arith.constant 0 : index
    %c0_8 = arith.constant 0 : index
    %c0_9 = arith.constant 0 : index
    %14 = vector.load %arg6[%c0_7, %c0_8, %c0_9] : memref<1x8x128xf32, #tpu.memory_space<vmem>>, vector<1x8x128xf32>
    %15 = vector.shape_cast %13 : vector<8x128xf32> to vector<1x8x128xf32>
    %16 = arith.addf %14, %15 : vector<1x8x128xf32>
    %c0_10 = arith.constant 0 : index
    %c0_11 = arith.constant 0 : index
    %c0_12 = arith.constant 0 : index
    %17 = vector.load %arg6[%c0_10, %c0_11, %c0_12] : memref<1x8x128xf32, #tpu.memory_space<vmem>>, vector<1x8x128xf32>
    tpu.vector_store %arg6[%c0_10, %c0_11, %c0_12], %16 {strides = array<i32>} : memref<1x8x128xf32, #tpu.memory_space<vmem>>, vector<1x8x128xf32>,
    %18 = arith.cmpi eq, %arg0, %arg1 : i32
    %19 = arith.addi %arg0, %arg1 : i32
    %c2_i32 = arith.constant 2 : i32
    %c0_i32_13 = arith.constant 0 : i32
    %20 = arith.cmpi eq, %c2_i32, %c0_i32_13 : i32
    %c1_i32 = arith.constant 1 : i32
    %21 = arith.select %20, %c1_i32, %c2_i32 : i32
    %22 = arith.remsi %19, %21 : i32
    %c0_i32_14 = arith.constant 0 : i32
    %23 = arith.cmpi ne, %22, %c0_i32_14 : i32
    %c0_i32_15 = arith.constant 0 : i32
    %24 = arith.cmpi slt, %22, %c0_i32_15 : i32
    %c0_i32_16 = arith.constant 0 : i32
    %25 = arith.cmpi slt, %21, %c0_i32_16 : i32
    %26 = arith.xori %24, %25 : i1
    %27 = arith.andi %26, %23 : i1
    %28 = arith.addi %22, %21 : i32
    %29 = arith.select %27, %28, %22 : i32
    %c0_i32_17 = arith.constant 0 : i32
    %30 = arith.cmpi eq, %29, %c0_i32_17 : i32
    %31 = arith.cmpi slt, %arg0, %arg1 : i32
    %32 = arith.andi %30, %31 : i1
    %33 = arith.ori %18, %32 : i1
    %true = arith.constant true
    %34 = arith.xori %30, %true : i1
    %35 = arith.cmpi sgt, %arg0, %arg1 : i32
    %36 = arith.andi %34, %35 : i1
    %37 = arith.ori %33, %36 : i1
    %38 = arith.extui %37 : i1 to i32
    %c0_i32_18 = arith.constant 0 : i32
    %39 = arith.cmpi ne, %38, %c0_i32_18 : i32
    scf.if %39 {
      %cst_19 = arith.constant 1.000000e+00 : f32
      %cst_20 = arith.constant 2.000000e+00 : f32
      %40 = arith.select %18, %cst_19, %cst_20 : f32
      %c0_21 = arith.constant 0 : index
      %c0_22 = arith.constant 0 : index
      %41 = vector.load %arg4[%c0_21, %c0_22] : memref<32x128xf32, #tpu.memory_space<vmem>>, vector<32x128xf32>
      %cst_23 = arith.constant dense<0.000000e+00> : vector<128x128xf32>
      %42 = tpu.matmul %3, %41, %cst_23 {dimension_numbers = #tpu.dot_dimension_numbers<[1], [0], [0], [1], [0, 0, 1, 1], [], []>} : vector<128x32xf32>, vector<32x128xf32>, vector<128x128xf32> -> vector<128x128xf32>
      %c0_24 = arith.constant 0 : index
      %c0_25 = arith.constant 0 : index
      %43 = vector.load %arg3[%c0_24, %c0_25] : memref<128x32xf32, #tpu.memory_space<vmem>>, vector<128x32xf32>
      %cst_26 = arith.constant dense<0.000000e+00> : vector<128x128xf32>
      %44 = tpu.matmul %43, %4, %cst_26 {dimension_numbers = #tpu.dot_dimension_numbers<[1], [0], [0], [1], [0, 0, 1, 1], [], []>} : vector<128x32xf32>, vector<32x128xf32>, vector<128x128xf32> -> vector<128x128xf32>
      %45 = arith.mulf %42, %42 : vector<128x128xf32>
      %46 = arith.mulf %45, %42 : vector<128x128xf32>
      %47 = arith.mulf %44, %44 : vector<128x128xf32>
      %48 = arith.mulf %47, %44 : vector<128x128xf32>
      %49 = arith.addf %46, %48 : vector<128x128xf32>
      %50 = vector.broadcast %40 : f32 to vector<128x128xf32>
      %51 = arith.mulf %50, %49 : vector<128x128xf32>
      %52 = vector.shape_cast %51 : vector<128x128xf32> to vector<16x8x128xf32>
      %cst_27 = arith.constant dense<0.000000e+00> : vector<8x128xf32>
      %53 = vector.multi_reduction <add>, %52, %cst_27 [0] : vector<16x8x128xf32> to vector<8x128xf32>
      %54 = vector.shape_cast %53 : vector<8x128xf32> to vector<8x1x128xf32>
      %cst_28 = arith.constant dense<0.000000e+00> : vector<8x128xf32>
      %55 = vector.multi_reduction <add>, %54, %cst_28 [1] : vector<8x1x128xf32> to vector<8x128xf32>
      %c0_29 = arith.constant 0 : index
      %c0_30 = arith.constant 0 : index
      %c0_31 = arith.constant 0 : index
      %56 = vector.load %arg6[%c0_29, %c0_30, %c0_31] : memref<1x8x128xf32, #tpu.memory_space<vmem>>, vector<1x8x128xf32>
      %57 = vector.shape_cast %55 : vector<8x128xf32> to vector<1x8x128xf32>
      %58 = arith.addf %56, %57 : vector<1x8x128xf32>
      %c0_32 = arith.constant 0 : index
      %c0_33 = arith.constant 0 : index
      %c0_34 = arith.constant 0 : index
      %59 = vector.load %arg6[%c0_32, %c0_33, %c0_34] : memref<1x8x128xf32, #tpu.memory_space<vmem>>, vector<1x8x128xf32>
      tpu.vector_store %arg6[%c0_32, %c0_33, %c0_34], %58 {strides = array<i32>} : memref<1x8x128xf32, #tpu.memory_space<vmem>>, vector<1x8x128xf32>,
    } else {
    }
    return
  }
  func.func @transform_0(%arg0: i32, %arg1: i32) -> (i32, i32) {
    %c0_i32 = arith.constant 0 : i32
    %c0_i32_0 = arith.constant 0 : i32
    return %arg0, %c0_i32 : i32, i32
  }
  func.func @transform_1(%arg0: i32, %arg1: i32) -> (i32, i32) {
    %c0_i32 = arith.constant 0 : i32
    %c0_i32_0 = arith.constant 0 : i32
    return %arg0, %c0_i32 : i32, i32
  }
  func.func @transform_2(%arg0: i32, %arg1: i32) -> (i32, i32) {
    %c0_i32 = arith.constant 0 : i32
    %c0_i32_0 = arith.constant 0 : i32
    return %c0_i32, %arg1 : i32, i32
  }
  func.func @transform_3(%arg0: i32, %arg1: i32) -> (i32, i32) {
    %c0_i32 = arith.constant 0 : i32
    %c0_i32_0 = arith.constant 0 : i32
    return %c0_i32, %arg1 : i32, i32
  }
  func.func @transform_4(%arg0: i32, %arg1: i32) -> (i32, i32, i32) {
    %c0_i32 = arith.constant 0 : i32
    %c0_i32_0 = arith.constant 0 : i32
    %c0_i32_1 = arith.constant 0 : i32
    return %arg0, %c0_i32, %c0_i32_0 : i32, i32, i32
  }
}

</mosaic_0001>

<bundles_post_ra>
// kernel: tpu_custom_call.1
= control target key start
LH: loop header
LB: loop body
LE: loop exit
PB: predicated region body
PF: predicated region fallthrough
CT: control target
= control target key end

     0   :  { %vm43_vm0 = vcmask 261120   ;;  %s1309_s0 = inlined_call_operand.vmem [shape: f32[128,32], index: 0, kind: input, shape index: {}]   ;;  %s1310_s1 = inlined_call_operand.vmem [shape: f32[128,32], index: 1, kind: input, shape index: {}]   ;;  %s1311_s2 = inlined_call_operand.vmem [shape: f32[32,128], index: 2, kind: input, shape index: {}]   ;;  %s1312_s3 = inlined_call_operand.vmem [shape: f32[32,128], index: 3, kind: input, shape index: {}]   ;;  %s1313_s4 = inlined_call_operand.hbm [shape: f32[1,8,128], index: 4, kind: output, shape index: {}]  }
   0x1   :  { %v39_v0 = vld [vmem:[%s1312_s3] sm:$0xff]  ;;  %v40_v1 = vld [vmem:[%s1312_s3 + $0x8] sm:$0xff]  ;;  %v41_v2 = vld [vmem:[%s1312_s3 + $0x10] sm:$0xff] }
   0x2   :  { %v1024_v3 = vpack.c.bf16 %v40_v1, %v39_v0  ;;  %v42_v4 = vld [vmem:[%s1312_s3 + $0x18] sm:$0xff]  ;;  %v23_v5 = vld [vmem:[%s1309_s0] sm:$0xff]  ;;  %v333_v9 = vld [vmem:[%s1311_s2 + $0x8] sm:$0xff] }
   0x3   :  { %v1122_v6 = vld [vmem:[%s1309_s0 + $0x40] sm:$0xff]  ;;  %v1028_v7 = vpack.c.bf16 %v42_v4, %v41_v2  ;;  %936 = vmatprep.mubr.msk.f32.mxu0 %vm43_vm0, %v23_v5  ;;  %v334_v11 = vld [vmem:[%s1311_s2 + $0x10] sm:$0xff]  ;;  %v335_v12 = vld [vmem:[%s1311_s2 + $0x18] sm:$0xff] }
   0x4   :  { %948 = vmatprep.mubr.msk.f32.mxu1 %vm43_vm0, %v1122_v6  ;;  %v332_v8 = vld [vmem:[%s1311_s2] sm:$0xff]  ;;  %1025 = vmatprep.subr.bf16.mxu0 %v1024_v3  ;;  %v24_v13 = vld [vmem:[%s1309_s0 + $0x8] sm:$0xff]  ;;  %v25_v15 = vld [vmem:[%s1309_s0 + $0x10] sm:$0xff]  ;;  %v1036_v17 = vpack.c.bf16 %v335_v12, %v334_v11 }
   0x5   :  { %1048 = vmatprep.subr.bf16.mxu1 %v1024_v3  ;;  %1027 = vmatpush3.bf16.msra.mxu0 %v1024_v3  ;;  %v1032_v10 = vpack.c.bf16 %v333_v9, %v332_v8  ;;  %v1145_v14 = vld [vmem:[%s1309_s0 + $0x48] sm:$0xff]  ;;  %v1153_v16 = vld [vmem:[%s1309_s0 + $0x50] sm:$0xff]  ;;  %v26_v18 = vld [vmem:[%s1309_s0 + $0x18] sm:$0xff] }
   0x6   :  { %1050 = vmatpush3.bf16.msra.mxu1 %v1024_v3  ;;  %1029 = vmatprep.subr.bf16.mxu0 %v1028_v7  ;;  %v34_v19 = vld [vmem:[%s1309_s0 + $0x58] sm:$0xff]  ;;  %v27_v20 = vld [vmem:[%s1309_s0 + $0x20] sm:$0xff] }
   0x7   :  { %1049 = vmatprep.subr.bf16.mxu1 %v1028_v7  ;;  %v35_v21 = vld [vmem:[%s1309_s0 + $0x60] sm:$0xff] }
   0x9   :  { %1031 = vmatpush3.bf16.msra.mxu0 %v1028_v7 }
   0xa   :  { %1051 = vmatpush3.bf16.msra.mxu1 %v1028_v7  ;;  %1041 = vmatprep.subr.bf16.mxu0 %v1024_v3 }
   0xb   :  { %1033 = vmatprep.subr.bf16.mxu1 %v1032_v10 }
   0xc   :  { %937 = vmatmul.mubr.msk.f32.vlgmr.msra.gmra.mrb[0].mxu0 %vm43_vm0, %v24_v13 }
   0xd   :  { %949 = vmatmul.mubr.msk.f32.vlgmr.msra.gmra.mrb[0].mxu1 %vm43_vm0, %v1145_v14  ;;  %1043 = vmatpush3.bf16.msra.mxu0 %v1024_v3 }
   0xe   :  { %1035 = vmatpush3.bf16.msra.mxu1 %v1032_v10  ;;  %939 = vmatprep.mubr.msk.f32.mxu0 %vm43_vm0, %v25_v15 }
   0xf   :  { %951 = vmatprep.mubr.msk.f32.mxu1 %vm43_vm0, %v1153_v16 }
  0x10   :  { %9 = vsyncpa [#allocation3], 0  ;;  %1037 = vmatprep.subr.bf16.mxu1 %v1036_v17  ;;  %1045 = vmatprep.subr.bf16.mxu0 %v1028_v7  ;;  %v28_v22 = vld [vmem:[%s1309_s0 + $0x28] sm:$0xff]  ;;  %v29_v24 = vld [vmem:[%s1309_s0 + $0x30] sm:$0xff] }
  0x11   :  { %940 = vmatmul.mubr.msk.f32.gmra.mrb[2].mxu0 %vm43_vm0, %v26_v18  ;;  %952 = vmatmul.mubr.msk.f32.gmra.mrb[2].mxu1 %vm43_vm0, %v34_v19  ;;  %v36_v23 = vld [vmem:[%s1309_s0 + $0x68] sm:$0xff]  ;;  %v37_v25 = vld [vmem:[%s1309_s0 + $0x70] sm:$0xff]  ;;  %v30_v26 = vld [vmem:[%s1309_s0 + $0x38] sm:$0xff] }
  0x12   :  { %942 = vmatprep.mubr.msk.f32.mxu0 %vm43_vm0, %v27_v20  ;;  %954 = vmatprep.mubr.msk.f32.mxu1 %vm43_vm0, %v35_v21  ;;  %v38_v27 = vld [vmem:[%s1309_s0 + $0x78] sm:$0xff]  ;;  %v481_v28 = vld [vmem:[%s1310_s1] sm:$0xff]  ;;  %v482_v29 = vld [vmem:[%s1310_s1 + $0x8] sm:$0xff] }
  0x13   :  { %1039 = vmatpush3.bf16.msra.mxu1 %v1036_v17  ;;  %1047 = vmatpush3.bf16.msra.mxu0 %v1028_v7  ;;  %v483_v30 = vld [vmem:[%s1310_s1 + $0x10] sm:$0xff]  ;;  %v484_v31 = vld [vmem:[%s1310_s1 + $0x18] sm:$0xff]  ;;  %v485_v32 = vld [vmem:[%s1310_s1 + $0x20] sm:$0xff] }
  0x14   :  { %v486_v33 = vld [vmem:[%s1310_s1 + $0x28] sm:$0xff]  ;;  %v487_v34 = vld [vmem:[%s1310_s1 + $0x30] sm:$0xff]  ;;  %v488_v35 = vld [vmem:[%s1310_s1 + $0x38] sm:$0xff] }
  0x15   :  { %943 = vmatmul.mubr.msk.f32.gmra.mrb[4].mxu0 %vm43_vm0, %v28_v22  ;;  %955 = vmatmul.mubr.msk.f32.gmra.mrb[4].mxu1 %vm43_vm0, %v36_v23  ;;  %v489_v36 = vld [vmem:[%s1310_s1 + $0x40] sm:$0xff]  ;;  %v490_v37 = vld [vmem:[%s1310_s1 + $0x48] sm:$0xff]  ;;  %v491_v38 = vld [vmem:[%s1310_s1 + $0x50] sm:$0xff] }
  0x16   :  { %945 = vmatprep.mubr.msk.f32.mxu0 %vm43_vm0, %v29_v24  ;;  %957 = vmatprep.mubr.msk.f32.mxu1 %vm43_vm0, %v37_v25  ;;  %v492_v39 = vld [vmem:[%s1310_s1 + $0x58] sm:$0xff]  ;;  %v493_v40 = vld [vmem:[%s1310_s1 + $0x60] sm:$0xff]  ;;  %v494_v41 = vld [vmem:[%s1310_s1 + $0x68] sm:$0xff] }
  0x17   :  { %v495_v42 = vld [vmem:[%s1310_s1 + $0x70] sm:$0xff]  ;;  %v496_v43 = vld [vmem:[%s1310_s1 + $0x78] sm:$0xff]  ;;  %s1078_s1 = smov [#allocation2]  }
  0x18   :  { %s812_s11 = sshll.u32 %s1078_s1, 4  ;;  %s813_s11 = int_to_ptr.vmem [resolvable:$true] %s812_s11 }
  0x19   :  { %946 = vmatmul.mubr.msk.f32.gmra.mrb[6].mxu0 %vm43_vm0, %v30_v26  ;;  %958 = vmatmul.mubr.msk.f32.gmra.mrb[6].mxu1 %vm43_vm0, %v38_v27  ;;  %s1054_s12 = scalar_lea.vmem %s813_s11, 128  ;;  %p1059_p1 = scmp.lt.s32.totalorder %s813_s11, %s813_s11 }
  0x1a   :  { %968 = vmatprep.mubr.msk.f32.mxu1 %vm43_vm0, %v23_v5  ;;  %1000 = vmatprep.mubr.msk.f32.mxu0 %vm43_vm0, %v481_v28  ;;  %p1055_p0 = scmp.ne.s32.totalorder %s813_s11, %s1054_s12  ;;  %p1060_p2 = scmp.lt.s32.totalorder %s1054_s12, %s1054_s12 }
  0x1c   :  { %p1061_p3 = por %p1060_p2, %p1059_p1 }
  0x1d   :  { %969 = vmatmul.mubr.msk.f32.vlgmr.msra.gmra.mrb[8].mxu1 %vm43_vm0, %v24_v13  ;;  %1001 = vmatmul.mubr.msk.f32.vlgmr.msra.gmra.mrb[8].mxu0 %vm43_vm0, %v482_v29 }
  0x1e   :  { %971 = vmatprep.mubr.msk.f32.mxu1 %vm43_vm0, %v25_v15  ;;  %1003 = vmatprep.mubr.msk.f32.mxu0 %vm43_vm0, %v483_v30  ;;  %p1062_p4 = pnand %p1061_p3, %p1055_p0 }
  0x21   :  { %972 = vmatmul.mubr.msk.f32.gmra.mrb[10].mxu1 %vm43_vm0, %v26_v18  ;;  %1004 = vmatmul.mubr.msk.f32.gmra.mrb[10].mxu0 %vm43_vm0, %v484_v31 }
  0x22   :  { %974 = vmatprep.mubr.msk.f32.mxu1 %vm43_vm0, %v27_v20  ;;  %1006 = vmatprep.mubr.msk.f32.mxu0 %vm43_vm0, %v485_v32 }
  0x25   :  { %975 = vmatmul.mubr.msk.f32.gmra.mrb[12].mxu1 %vm43_vm0, %v28_v22  ;;  %1007 = vmatmul.mubr.msk.f32.gmra.mrb[12].mxu0 %vm43_vm0, %v486_v33 }
  0x26   :  { %977 = vmatprep.mubr.msk.f32.mxu1 %vm43_vm0, %v29_v24  ;;  %1009 = vmatprep.mubr.msk.f32.mxu0 %vm43_vm0, %v487_v34 }
  0x29   :  { %978 = vmatmul.mubr.msk.f32.gmra.mrb[14].mxu1 %vm43_vm0, %v30_v26  ;;  %1010 = vmatmul.mubr.msk.f32.gmra.mrb[14].mxu0 %vm43_vm0, %v488_v35 }
  0x2a   :  { %980 = vmatprep.mubr.msk.f32.mxu1 %vm43_vm0, %v1122_v6  ;;  %1012 = vmatprep.mubr.msk.f32.mxu0 %vm43_vm0, %v489_v36 }
  0x2d   :  { %981 = vmatmul.mubr.msk.f32.gmra.mrb[16].mxu1 %vm43_vm0, %v1145_v14  ;;  %1013 = vmatmul.mubr.msk.f32.gmra.mrb[16].mxu0 %vm43_vm0, %v490_v37 }
  0x2e   :  { %983 = vmatprep.mubr.msk.f32.mxu1 %vm43_vm0, %v1153_v16  ;;  %1015 = vmatprep.mubr.msk.f32.mxu0 %vm43_vm0, %v491_v38 }
  0x31   :  { %984 = vmatmul.mubr.msk.f32.gmra.mrb[18].mxu1 %vm43_vm0, %v34_v19  ;;  %1016 = vmatmul.mubr.msk.f32.gmra.mrb[18].mxu0 %vm43_vm0, %v492_v39 }
  0x32   :  { %986 = vmatprep.mubr.msk.f32.mxu1 %vm43_vm0, %v35_v21  ;;  %1018 = vmatprep.mubr.msk.f32.mxu0 %vm43_vm0, %v493_v40 }
  0x35   :  { %987 = vmatmul.mubr.msk.f32.gmra.mrb[20].mxu1 %vm43_vm0, %v36_v23  ;;  %1019 = vmatmul.mubr.msk.f32.gmra.mrb[20].mxu0 %vm43_vm0, %v494_v41 }
  0x36   :  { %989 = vmatprep.mubr.msk.f32.mxu1 %vm43_vm0, %v37_v25  ;;  %1021 = vmatprep.mubr.msk.f32.mxu0 %vm43_vm0, %v495_v42 }
  0x39   :  { %990 = vmatmul.mubr.msk.f32.gmra.mrb[22].mxu1 %vm43_vm0, %v38_v27  ;;  %1022 = vmatmul.mubr.msk.f32.gmra.mrb[22].mxu0 %vm43_vm0, %v496_v43 }
  0xdf   :  { %v938_v44 = vpop.f32.mrb[0].mxu0 }
  0xe0   :  { %v950_v45 = vpop.f32.mrb[0].mxu1  ;;  %v238_v46 = vmul.f32 %v938_v44, %v938_v44  ;;  %v158_v47 = vpop.f32.mrb[1].mxu0 }
  0xe1   :  { %v198_v48 = vpop.f32.mrb[1].mxu1  ;;  %v237_v49 = vmul.f32 %v158_v47, %v158_v47  ;;  %v246_v60 = vmul.f32 %v950_v45, %v950_v45 }
  0xe2   :  { %v254_v50 = vmul.f32 %v938_v44, %v238_v46  ;;  %v245_v2 = vmul.f32 %v198_v48, %v198_v48 }
  0xe3   :  { %v253_v51 = vmul.f32 %v237_v49, %v158_v47  ;;  %v262_v9 = vmul.f32 %v950_v45, %v246_v60 }
  0xe4   :  { %v941_v52 = vpop.f32.mrb[2].mxu0  ;;  %v953_v53 = vpop.f32.mrb[2].mxu1  ;;  %v270_v54 = vmul.f32 -2.0, %v254_v50  ;;  %v261_v17 = vmul.f32 %v245_v2, %v198_v48 }
  0xe5   :  { %v240_v55 = vmul.f32 %v941_v52, %v941_v52  ;;  %v168_v56 = vpop.f32.mrb[3].mxu0  ;;  %v208_v57 = vpop.f32.mrb[3].mxu1  ;;  %v269_v58 = vmul.f32 -2.0, %v253_v51  ;;  %v248_v3 = vmul.f32 %v953_v53, %v953_v53  ;;  %v278_v25 = vmul.f32 -2.0, %v262_v9 }
  0xe6   :  { %v239_v59 = vmul.f32 %v168_v56, %v168_v56  ;;  %v247_v10 = vmul.f32 %v208_v57, %v208_v57  ;;  %v277_v34 = vmul.f32 -2.0, %v261_v17 }
  0xe7   :  { %v285_v61 = vadd.f32 %v270_v54, %v269_v58  ;;  %v256_v62 = vmul.f32 %v941_v52, %v240_v55  ;;  %v264_v18 = vmul.f32 %v953_v53, %v248_v3 }
  0xe8   :  { %v255_v63 = vmul.f32 %v239_v59, %v168_v56  ;;  %v944_v0 = vpop.f32.mrb[4].mxu0  ;;  %v956_v1 = vpop.f32.mrb[4].mxu1  ;;  %v263_v26 = vmul.f32 %v247_v10, %v208_v57 }
  0xe9   :  { %v242_v4 = vmul.f32 %v944_v0, %v944_v0  ;;  %v178_v5 = vpop.f32.mrb[5].mxu0  ;;  %v218_v6 = vpop.f32.mrb[5].mxu1  ;;  %v272_v11 = vmul.f32 -2.0, %v256_v62  ;;  %v250_v27 = vmul.f32 %v956_v1, %v956_v1  ;;  %v1288_v35 = vmul.f32 -2.0, %v264_v18 }
  0xea   :  { %v271_v7 = vmul.f32 -2.0, %v255_v63  ;;  %v241_v8 = vmul.f32 %v178_v5, %v178_v5  ;;  %v249_v36 = vmul.f32 %v218_v6, %v218_v6  ;;  %v279_v44 = vmul.f32 -2.0, %v263_v26 }
  0xeb   :  { %v258_v13 = vmul.f32 %v944_v0, %v242_v4  ;;  %v266_v45 = vmul.f32 %v956_v1, %v250_v27 }
  0xec   :  { %v286_v12 = vadd.f32 %v285_v61, %v271_v7  ;;  %v257_v14 = vmul.f32 %v241_v8, %v178_v5  ;;  %v947_v15 = vpop.f32.mrb[6].mxu0  ;;  %v1284_v16 = vpop.f32.mrb[6].mxu1  ;;  %v265_v54 = vmul.f32 %v249_v36, %v218_v6 }
  0xed   :  { %v244_v19 = vmul.f32 %v947_v15, %v947_v15  ;;  %v188_v20 = vpop.f32.mrb[7].mxu0  ;;  %v1286_v21 = vpop.f32.mrb[7].mxu1  ;;  %v274_v28 = vmul.f32 -2.0, %v258_v13  ;;  %v282_v4 = vmul.f32 -2.0, %v266_v45 }
  0xee   :  { %v273_v22 = vmul.f32 -2.0, %v257_v14  ;;  %v287_v23 = vadd.f32 %v286_v12, %v272_v11  ;;  %v243_v24 = vmul.f32 %v188_v20, %v188_v20  ;;  %v251_v0 = vmul.f32 %v1286_v21, %v1286_v21 }
  0xef   :  { %v260_v30 = vmul.f32 %v947_v15, %v244_v19 }
  0xf0   :  { %v288_v29 = vadd.f32 %v287_v23, %v273_v22  ;;  %v259_v31 = vmul.f32 %v243_v24, %v188_v20  ;;  %v970_v32 = vpop.f32.mrb[8].mxu1  ;;  %v1002_v33 = vpop.f32.mrb[8].mxu0  ;;  %v252_v22 = vmul.f32 %v1284_v16, %v1284_v16  ;;  %v267_v23 = vmul.f32 %v251_v0, %v1286_v21 }
  0xf1   :  { %v691_v37 = vmul.f32 %v970_v32, %v970_v32  ;;  %v402_v38 = vpop.f32.mrb[9].mxu1  ;;  %v611_v39 = vpop.f32.mrb[9].mxu0  ;;  %v723_v42 = vmul.f32 %v1002_v33, %v1002_v33  ;;  %v276_v48 = vmul.f32 -2.0, %v260_v30 }
  0xf2   :  { %v275_v40 = vmul.f32 -2.0, %v259_v31  ;;  %v289_v41 = vadd.f32 %v288_v29, %v274_v28  ;;  %v690_v43 = vmul.f32 %v402_v38, %v402_v38  ;;  %v722_v47 = vmul.f32 %v611_v39, %v611_v39 }
  0xf3   :  { %v707_v46 = vmul.f32 %v970_v32, %v691_v37  ;;  %v739_v50 = vmul.f32 %v1002_v33, %v723_v42  ;;  %v281_v33 = vmul.f32 -2.0, %v265_v54  ;;  %v268_v21 = vmul.f32 %v1284_v16, %v252_v22 }
  0xf4   :  { %v290_v49 = vadd.f32 %v289_v41, %v275_v40  ;;  %v706_v51 = vmul.f32 %v690_v43, %v402_v38  ;;  %v973_v52 = vpop.f32.mrb[10].mxu1  ;;  %v1005_v53 = vpop.f32.mrb[10].mxu0  ;;  %v738_v55 = vmul.f32 %v722_v47, %v611_v39 }
  0xf5   :  { %v693_v56 = vmul.f32 %v973_v52, %v973_v52  ;;  %v725_v57 = vmul.f32 %v1005_v53, %v1005_v53  ;;  %v412_v58 = vpop.f32.mrb[11].mxu1  ;;  %v621_v59 = vpop.f32.mrb[11].mxu0  ;;  %v755_v61 = vadd.f32 %v739_v50, %v707_v46  ;;  %v283_v46 = vmul.f32 -2.0, %v267_v23 }
  0xf6   :  { %v291_v60 = vadd.f32 %v290_v49, %v276_v48  ;;  %v692_v62 = vmul.f32 %v412_v58, %v412_v58  ;;  %v724_v63 = vmul.f32 %v621_v59, %v621_v59  ;;  %v754_v1 = vadd.f32 %v738_v55, %v706_v51 }
  0xf7   :  { %v709_v2 = vmul.f32 %v973_v52, %v693_v56  ;;  %v741_v3 = vmul.f32 %v1005_v53, %v725_v57 }
  0xf8   :  { %v292_v5 = vadd.f32 %v291_v60, %v277_v34  ;;  %v708_v7 = vmul.f32 %v692_v62, %v412_v58  ;;  %v740_v8 = vmul.f32 %v724_v63, %v621_v59  ;;  %v976_v6 = vpop.f32.mrb[12].mxu1  ;;  %v1008_v9 = vpop.f32.mrb[12].mxu0  ;;  %v787_v10 = vadd.f32 %v755_v61, %v754_v1 }
  0xf9   :  { %v757_v11 = vadd.f32 %v741_v3, %v709_v2  ;;  %v695_v12 = vmul.f32 %v976_v6, %v976_v6  ;;  %v727_v13 = vmul.f32 %v1008_v9, %v1008_v9  ;;  %v422_v14 = vpop.f32.mrb[13].mxu1  ;;  %v631_v15 = vpop.f32.mrb[13].mxu0  ;;  %v284_v63 = vmul.f32 -2.0, %v268_v21 }
  0xfa   :  { %v293_v17 = vadd.f32 %v292_v5, %v278_v25  ;;  %v756_v18 = vadd.f32 %v740_v8, %v708_v7  ;;  %v694_v19 = vmul.f32 %v422_v14, %v422_v14  ;;  %v726_v20 = vmul.f32 %v631_v15, %v631_v15 }
  0xfb   :  { %v711_v24 = vmul.f32 %v976_v6, %v695_v12  ;;  %v743_v26 = vmul.f32 %v1008_v9, %v727_v13 }
  0xfc   :  { %v294_v27 = vadd.f32 %v293_v17, %v279_v44  ;;  %v788_v28 = vadd.f32 %v787_v10, %v756_v18  ;;  %v710_v29 = vmul.f32 %v694_v19, %v422_v14  ;;  %v742_v30 = vmul.f32 %v726_v20, %v631_v15  ;;  %v979_v31 = vpop.f32.mrb[14].mxu1  ;;  %v1011_v32 = vpop.f32.mrb[14].mxu0 }
  0xfd   :  { %v759_v34 = vadd.f32 %v743_v26, %v711_v24  ;;  %v697_v36 = vmul.f32 %v979_v31, %v979_v31  ;;  %v729_v25 = vmul.f32 %v1011_v32, %v1011_v32  ;;  %v432_v37 = vpop.f32.mrb[15].mxu1  ;;  %v641_v38 = vpop.f32.mrb[15].mxu0 }
  0xfe   :  { %v295_v39 = vadd.f32 %v294_v27, %v1288_v35  ;;  %v758_v40 = vadd.f32 %v742_v30, %v710_v29  ;;  %v789_v41 = vadd.f32 %v788_v28, %v757_v11  ;;  %v696_v42 = vmul.f32 %v432_v37, %v432_v37 }
  0xff   :  { %v713_v43 = vmul.f32 %v979_v31, %v697_v36  ;;  %v745_v44 = vmul.f32 %v1011_v32, %v729_v25  ;;  %v728_v45 = vmul.f32 %v641_v38, %v641_v38 }
 0x100   :  { %v296_v47 = vadd.f32 %v295_v39, %v281_v33  ;;  %v790_v48 = vadd.f32 %v789_v41, %v758_v40  ;;  %v712_v49 = vmul.f32 %v696_v42, %v432_v37  ;;  %v982_v50 = vpop.f32.mrb[16].mxu1  ;;  %v1014_v51 = vpop.f32.mrb[16].mxu0 }
 0x101   :  { %v761_v52 = vadd.f32 %v745_v44, %v713_v43  ;;  %v744_v53 = vmul.f32 %v728_v45, %v641_v38  ;;  %v699_v54 = vmul.f32 %v982_v50, %v982_v50  ;;  %v731_v55 = vmul.f32 %v1014_v51, %v1014_v51  ;;  %v442_v56 = vpop.f32.mrb[17].mxu1  ;;  %v651_v35 = vpop.f32.mrb[17].mxu0 }
 0x102   :  { %v297_v57 = vadd.f32 %v296_v47, %v282_v4  ;;  %v791_v58 = vadd.f32 %v790_v48, %v759_v34  ;;  %v698_v59 = vmul.f32 %v442_v56, %v442_v56  ;;  %v730_v60 = vmul.f32 %v651_v35, %v651_v35 }
 0x103   :  { %v760_v16 = vadd.f32 %v744_v53, %v712_v49  ;;  %v715_v61 = vmul.f32 %v982_v50, %v699_v54  ;;  %v747_v62 = vmul.f32 %v1014_v51, %v731_v55 }
 0x104   :  { %v298_v0 = vadd.f32 %v297_v57, %v283_v46  ;;  %v714_v1 = vmul.f32 %v698_v59, %v442_v56  ;;  %v746_v2 = vmul.f32 %v730_v60, %v651_v35  ;;  %v985_v3 = vpop.f32.mrb[18].mxu1  ;;  %v1017_v5 = vpop.f32.mrb[18].mxu0 }
 0x105   :  { %v792_v7 = vadd.f32 %v791_v58, %v760_v16  ;;  %v763_v8 = vadd.f32 %v747_v62, %v715_v61  ;;  %v701_v6 = vmul.f32 %v985_v3, %v985_v3  ;;  %v733_v9 = vmul.f32 %v1017_v5, %v1017_v5  ;;  %v452_v10 = vpop.f32.mrb[19].mxu1  ;;  %v661_v11 = vpop.f32.mrb[19].mxu0 }
 0x106   :  { %v299_v12 = vadd.f32 %v298_v0, %v284_v63  ;;  %v762_v4 = vadd.f32 %v746_v2, %v714_v1  ;;  %v700_v13 = vmul.f32 %v452_v10, %v452_v10  ;;  %v732_v14 = vmul.f32 %v661_v11, %v661_v11 }
 0x107   :  { %v793_v15 = vadd.f32 %v792_v7, %v761_v52  ;;  %v717_v17 = vmul.f32 %v985_v3, %v701_v6  ;;  %v749_v18 = vmul.f32 %v1017_v5, %v733_v9 }
 0x108   :  { %v716_v19 = vmul.f32 %v700_v13, %v452_v10  ;;  %v748_v20 = vmul.f32 %v732_v14, %v661_v11  ;;  %v988_v22 = vpop.f32.mrb[20].mxu1  ;;  %v1020_v23 = vpop.f32.mrb[20].mxu0 }
 0x109   :  { %v794_v24 = vadd.f32 %v793_v15, %v762_v4  ;;  %v765_v26 = vadd.f32 %v749_v18, %v717_v17  ;;  %v703_v27 = vmul.f32 %v988_v22, %v988_v22  ;;  %v735_v28 = vmul.f32 %v1020_v23, %v1020_v23  ;;  %v462_v29 = vpop.f32.mrb[21].mxu1  ;;  %v671_v30 = vpop.f32.mrb[21].mxu0 }
 0x10a   :  { %v764_v31 = vadd.f32 %v748_v20, %v716_v19  ;;  %v702_v32 = vmul.f32 %v462_v29, %v462_v29  ;;  %v734_v33 = vmul.f32 %v671_v30, %v671_v30 }
 0x10b   :  { %v795_v34 = vadd.f32 %v794_v24, %v763_v8  ;;  %v719_v36 = vmul.f32 %v988_v22, %v703_v27  ;;  %v751_v25 = vmul.f32 %v1020_v23, %v735_v28 }
 0x10c   :  { %v718_v37 = vmul.f32 %v702_v32, %v462_v29  ;;  %v750_v38 = vmul.f32 %v734_v33, %v671_v30  ;;  %v991_v39 = vpop.f32.mrb[22].mxu1  ;;  %v1023_v40 = vpop.f32.mrb[22].mxu0 }
 0x10d   :  { %v796_v41 = vadd.f32 %v795_v34, %v764_v31  ;;  %v767_v42 = vadd.f32 %v751_v25, %v719_v36  ;;  %v705_v21 = vmul.f32 %v991_v39, %v991_v39  ;;  %v737_v43 = vmul.f32 %v1023_v40, %v1023_v40  ;;  %v472_v44 = vpop.f32.mrb[23].mxu1  ;;  %v681_v45 = vpop.f32.mrb[23].mxu0 }
 0x10e   :  { %v766_v46 = vadd.f32 %v750_v38, %v718_v37  ;;  %v704_v47 = vmul.f32 %v472_v44, %v472_v44  ;;  %v736_v48 = vmul.f32 %v681_v45, %v681_v45 }
 0x10f   :  { %v797_v49 = vadd.f32 %v796_v41, %v765_v26  ;;  %v721_v50 = vmul.f32 %v991_v39, %v705_v21  ;;  %v753_v51 = vmul.f32 %v1023_v40, %v737_v43 }
 0x110   :  { %v720_v52 = vmul.f32 %v704_v47, %v472_v44  ;;  %v752_v53 = vmul.f32 %v736_v48, %v681_v45 }
 0x111   :  { %v798_v54 = vadd.f32 %v797_v49, %v766_v46  ;;  %v769_v55 = vadd.f32 %v753_v51, %v721_v50 }
 0x112   :  { %v768_v56 = vadd.f32 %v752_v53, %v720_v52 }
 0x113   :  { %v799_v35 = vadd.f32 %v798_v54, %v767_v42 }
 0x115   :  { %v800_v57 = vadd.f32 %v799_v35, %v768_v56 }
 0x117   :  { %v801_v58 = vadd.f32 %v800_v57, %v769_v55 }
 0x119   :  { %v804_v59 = vadd.f32 %v801_v58, %v299_v12 }
 0x11b   :  { %805 = vst [vmem:[#allocation2] sm:$0xff] %v804_v59 }
 0x11c   :  { %1065 = shalt.err (!%p1062_p4)
}
 0x11d   :  { %s1066_s14 = scalar_lea.hbm %s1313_s4, 128 }
 0x11e   :  { %p1067_p5 = scmp.ne.s32.totalorder %s1313_s4, %s1066_s14  ;;  %p1070_p6 = scmp.lt.u32.totalorder %s1066_s14, %s1313_s4 }
 0x120   :  { %p1072_p7 = pnand %p1070_p6, %p1067_p5 }
 0x122   :  { %1075 = shalt.err (!%p1072_p7)
}
 0x123   :  { %815 = dma.vmem_to_hbm [thread:$0]  %s813_s11, 128, %s1313_s4, [#allocation3]  }
 0x124   :  { %1076 = dma.done.wait [#allocation3], 128  }
 0x125   :  { %1077 = vsyncadd [#allocation3], 4294967168 }
 0x126   :  { %819 = vsyncpa [#allocation3], 1 }

</bundles_post_ra>
